<compile_context>
chip_gen: v6e
topology: v6e:2x2x1
jax: 0.10.0
libtpu: 0.0.40
codegen_flags: <defaults>
</compile_context>

<pallas_src>
import functools

import jax
import jax.numpy as jnp
from jax.experimental import pallas as pl
from jax.experimental.pallas import tpu as pltpu

KERNEL_SIZE = 7
BN_EPS = 1e-5


def _round_up(x: int, m: int) -> int:
    return -(-x // m) * m


def _vmem_capacity_bytes(default: int = 64 * 1024 * 1024) -> int:
    """Physical VMEM per TensorCore (v5e/v6e: 128 MiB, v7x: 64 MiB)."""
    try:
        cap = getattr(pltpu.get_tpu_info(), "vmem_capacity_bytes", None)
        return int(cap) if cap else default
    except Exception:  # conservative (v7x-safe) fallback
        return default


def _first_layers_kernel(x_ref, w_ref, b_ref, o_ref, xstk_ref, *, cin_pad, ksize, tl):
    """One grid step = one lane-dense output slab.

    x_ref:    (cin_pad, tl + K - 1)  bf16  input slab, conv halo baked in
    w_ref:    (Cout, K*cin_pad)      bf16  BN-folded conv weights (tap-major rows)
    b_ref:    (Cout, 1)              f32   BN-folded bias
    o_ref:    (Cout, tl)             f32   output slab, tl % 128 == 0 (lane-dense)
    xstk_ref: (K*cin_pad, tl)        bf16  stacked shifted windows (matmul RHS)
    """
    # Stack the K shifted windows.  cin_pad is a multiple of 16 so every bf16
    # store is sublane-tile aligned; tl is a multiple of 128 so every store is
    # lane-dense.  The shifted loads only cost lane rotates (XLU slot).
    for k in range(ksize):
        xstk_ref[k * cin_pad:(k + 1) * cin_pad, :] = x_ref[:, k:k + tl]

    # Conv1d('same') + BatchNorm1d(eval) folded into ONE bf16 MXU matmul with
    # f32 accumulation.
    y = jnp.dot(w_ref[...], xstk_ref[...], preferred_element_type=jnp.float32)
    y = y + b_ref[...]

    # SiLU: y * sigmoid(y); sigmoid via tanh so the transcendental runs on the
    # (otherwise idle) EUP slot.
    o_ref[...] = (y * (0.5 * jnp.tanh(0.5 * y) + 0.5)).astype(o_ref.dtype)


def _plan_tiles(batch, lp, cin_pad, cout, ksize):
    """Pick (B_tile, tl, grid_l, vmem_limit) from the per-core VMEM budget.

    tl is a lane-dense tile width (multiple of 128).  Short sequences are
    batch-folded (B_tile padded sequences flattened into one slab); long
    sequences are halo-tiled along the sequence with B_tile = 1.
    """
    vmem_cap = _vmem_capacity_bytes()
    # Leave headroom under physical VMEM: ~45 MiB limit on v7x (64 MiB/TC),
    # ~90 MiB on v5e/v6e (128 MiB/TC).
    vmem_limit = max(32 * 1024 * 1024, min(int(vmem_cap * 0.7), 96 * 1024 * 1024))
    budget = int(vmem_limit * 0.7)  # per-step working-set target

    # Bytes per output column: double-buffered bf16 input block + bf16 stacked
    # slab + double-buffered f32 output block.
    bytes_per_col = 2 * cin_pad * 2 + ksize * cin_pad * 2 + 2 * cout * 4
    fixed = 2 * cout * ksize * cin_pad * 2 + cout * 4 + (1 << 16)  # weights + bias + slack
    tl_max = max(128, ((budget - fixed) // bytes_per_col) // 128 * 128)

    if lp <= tl_max:
        # Batch-folded path: whole (padded) sequences, several per grid step.
        b_tile = max(1, min(batch, tl_max // lp))
        if batch > 1:  # keep >= 2 grid steps so both v7x TensorCores get work
            b_tile = min(b_tile, -(-batch // 2))
        while b_tile > 1 and _round_up(b_tile * lp, 128) > tl_max:
            b_tile -= 1
        tl = _round_up(b_tile * lp, 128)
        grid_l = 1
    else:
        # Long-sequence path: one element per step, halo-tiled along L.
        b_tile = 1
        tl = tl_max
        grid_l = -(-lp // tl)
    return b_tile, tl, grid_l, vmem_limit


@jax.jit
def first_layers_block(x_ncl, w, b, gamma, beta, mean, var):
    """Conv1d(k=7, 'same') + BatchNorm1d(eval) + SiLU.

    x_ncl: (B, Cin, L) float32   (PyTorch NCL layout)
    w:     (Cout, Cin, K) float32 (PyTorch Conv1d weight layout)
    b, gamma, beta, mean, var: (Cout,) float32
    Returns (B, Cout, L) float32.
    """
    B, Cin, L = x_ncl.shape
    Cout, _, K = w.shape
    pad = K // 2
    Lp = L + 2 * pad
    cin_pad = _round_up(Cin, 16)  # 16: keeps bf16 stack stores sublane-tile aligned

    # --- Fold BatchNorm1d (eval) and the conv bias into the conv weights.
    scale = (gamma * jax.lax.rsqrt(var + BN_EPS)).astype(jnp.float32)      # (Cout,)
    w_s = w.astype(jnp.float32) * scale[:, None, None]                     # (Cout, Cin, K)
    b_fold = ((b - mean) * scale + beta).astype(jnp.float32).reshape(Cout, 1)
    # (Cout, Cin, K) -> (Cout, K, cin_pad) -> (Cout, K*cin_pad): tap-major rows,
    # channels zero-padded to match the in-kernel stack layout.
    w_t = jnp.transpose(w_s, (0, 2, 1))
    w_t = jnp.pad(w_t, ((0, 0), (0, 0), (0, cin_pad - Cin)))
    w_fold = w_t.reshape(Cout, K * cin_pad).astype(jnp.bfloat16)

    # --- Tiling plan (generation-aware, derived from VMEM capacity).
    B_tile, tl, grid_l, vmem_limit = _plan_tiles(B, Lp, cin_pad, Cout, K)
    G = -(-B // B_tile)
    B_padded = G * B_tile

    # --- Build per-tile input slabs with ALL padding (channel, conv halo,
    #     batch, lane round-up) baked in; the kernel does no zero fills.
    #     Each batch element keeps its own +/-pad zero halo, so flattening
    #     B_tile elements into one slab cannot leak across element boundaries.
    xp = jnp.pad(x_ncl.astype(jnp.float32),
                 ((0, B_padded - B), (0, cin_pad - Cin), (pad, pad)))      # (Bp, cin_pad, Lp)
    flat = xp.reshape(G, B_tile, cin_pad, Lp).transpose(0, 2, 1, 3)
    flat = flat.reshape(G, cin_pad, B_tile * Lp)
    w_tot = grid_l * tl + K - 1
    flat = jnp.pad(flat, ((0, 0), (0, 0), (0, w_tot - B_tile * Lp)))
    if grid_l == 1:
        xtiles = flat[:, None]                                             # (G, 1, cin_pad, tl+K-1)
    else:
        xtiles = jnp.stack(
            [flat[:, :, li * tl: li * tl + tl + K - 1] for li in range(grid_l)], axis=1)
    xtiles = xtiles.astype(jnp.bfloat16)

    kernel = functools.partial(_first_layers_kernel, cin_pad=cin_pad, ksize=K, tl=tl)

    out = pl.pallas_call(
        kernel,
        out_shape=jax.ShapeDtypeStruct((G, Cout, grid_l * tl), jnp.float32),
        grid_spec=pltpu.PrefetchScalarGridSpec(
            num_scalar_prefetch=0,
            grid=(G, grid_l),
            in_specs=[
                # Per-(group, seq-tile) input slab with the conv halo baked in.
                pl.BlockSpec((None, None, cin_pad, tl + K - 1),
                             lambda g, li: (g, li, 0, 0)),
                # Folded weights / bias: constant block, fetched once.
                pl.BlockSpec((Cout, K * cin_pad), lambda g, li: (0, 0)),
                pl.BlockSpec((Cout, 1), lambda g, li: (0, 0)),
            ],
            out_specs=pl.BlockSpec((None, Cout, tl), lambda g, li: (g, 0, li)),
            scratch_shapes=[pltpu.VMEM((K * cin_pad, tl), jnp.bfloat16)],
        ),
        compiler_params=pltpu.CompilerParams(
            # No carried state across grid steps -> both axes megacore-shardable.
            dimension_semantics=("parallel", "parallel"),
            vmem_limit_bytes=vmem_limit,
        ),
    )(xtiles, w_fold, b_fold)

    # --- Un-flatten: keep the first L (valid) columns of each element's Lp chunk.
    y = out[:, :, :B_tile * Lp].reshape(G, Cout, B_tile, Lp)[..., :L]
    y = jnp.transpose(y, (0, 2, 1, 3)).reshape(B_padded, Cout, L)
    return y[:B]


def _reference(x_ncl, w, b, gamma, beta, mean, var):
    """Pure-JAX f32 reference of Conv1d('same') + BN(eval) + SiLU, NCL layout."""
    B, Cin, L = x_ncl.shape
    Cout, _, K = w.shape
    pad = K // 2
    xp = jnp.pad(x_ncl, ((0, 0), (0, 0), (pad, pad)))
    acc = jnp.zeros((B, Cout, L), jnp.float32)
    for k in range(K):
        acc = acc + jnp.einsum("bcl,dc->bdl", xp[:, :, k:k + L], w[:, :, k])
    acc = acc + b[None, :, None]
    y = (acc - mean[None, :, None]) * jax.lax.rsqrt(var[None, :, None] + BN_EPS) \
        * gamma[None, :, None] + beta[None, :, None]
    return y * jax.nn.sigmoid(y)


if __name__ == "__main__":
    # Small shapes consistent with FirstLayersBlock(in_channels, out_channels, seqsize).
    batch, in_channels, out_channels, seqsize = 2, 4, 32, 16

    key = jax.random.PRNGKey(0)
    kx, kw, kb, kg, kbe, km, kv = jax.random.split(key, 7)

    x = jax.random.normal(kx, (batch, in_channels, seqsize), jnp.float32)
    # PyTorch Conv1d weight layout: (Cout, Cin, K).
    w = 0.1 * jax.random.normal(kw, (out_channels, in_channels, KERNEL_SIZE), jnp.float32)
    b = 0.1 * jax.random.normal(kb, (out_channels,), jnp.float32)
    gamma = 1.0 + 0.1 * jax.random.normal(kg, (out_channels,), jnp.float32)
    beta = 0.1 * jax.random.normal(kbe, (out_channels,), jnp.float32)
    mean = 0.1 * jax.random.normal(km, (out_channels,), jnp.float32)
    var = 1.0 + 0.1 * jax.random.uniform(kv, (out_channels,), jnp.float32)

    out = jax.block_until_ready(first_layers_block(x, w, b, gamma, beta, mean, var))
    ref = _reference(x, w, b, gamma, beta, mean, var)

    assert out.shape == (batch, out_channels, seqsize), out.shape
    max_err = float(jnp.max(jnp.abs(out - ref)))
    # bf16 MXU inputs (f32 accumulation / f32 epilogue) -> slightly looser
    # tolerance than a pure-f32 pipeline.
    assert jnp.allclose(out, ref, atol=2e-2, rtol=2e-2), f"mismatch vs reference: {max_err}"

    print("KERNEL_OK")
</pallas_src>

<mosaic_0001>
module attributes {stable_mosaic.version = 11 : i64} {
  func.func @_first_layers_kernel(%arg0: i32, %arg1: i32, %arg2: memref<1x1x16x134xbf16, #tpu.memory_space<vmem>>, %arg3: memref<32x112xbf16, #tpu.memory_space<vmem>>, %arg4: memref<32x1xf32, #tpu.memory_space<vmem>>, %arg5: memref<1x32x128xf32, #tpu.memory_space<vmem>>, %arg6: memref<112x128xbf16, #tpu.memory_space<vmem>>) attributes {dimension_semantics = [#tpu.dimension_semantics<parallel>, #tpu.dimension_semantics<parallel>], iteration_bounds = array<i64: 2, 1>, scalar_prefetch = 0 : i64, scratch_operands = 1 : i64, tpu.core_type = #tpu.core_type<tc>, window_params = [{transform_indices = @transform_0, window_bounds = array<i64: 1, 1, 16, 134>}, {pipeline_mode = #tpu.pipeline_mode<synchronous>, transform_indices = @transform_1, window_bounds = array<i64: 32, 112>}, {pipeline_mode = #tpu.pipeline_mode<synchronous>, transform_indices = @transform_2, window_bounds = array<i64: 32, 1>}, {transform_indices = @transform_3, window_bounds = array<i64: 1, 32, 128>}]} {
    %c0 = arith.constant 0 : index
    %c0_0 = arith.constant 0 : index
    %c0_1 = arith.constant 0 : index
    %c0_2 = arith.constant 0 : index
    %0 = vector.load %arg2[%c0, %c0_0, %c0_1, %c0_2] : memref<1x1x16x134xbf16, #tpu.memory_space<vmem>>, vector<1x1x16x128xbf16>
    %1 = vector.shape_cast %0 : vector<1x1x16x128xbf16> to vector<16x128xbf16>
    %c0_3 = arith.constant 0 : index
    %c0_4 = arith.constant 0 : index
    %2 = vector.load %arg6[%c0_3, %c0_4] : memref<112x128xbf16, #tpu.memory_space<vmem>>, vector<16x128xbf16>
    tpu.vector_store %arg6[%c0_3, %c0_4], %1 {strides = array<i32>} : memref<112x128xbf16, #tpu.memory_space<vmem>>, vector<16x128xbf16>,
    %c0_5 = arith.constant 0 : index
    %c0_6 = arith.constant 0 : index
    %c0_7 = arith.constant 0 : index
    %c1 = arith.constant 1 : index
    %3 = vector.load %arg2[%c0_5, %c0_6, %c0_7, %c1] : memref<1x1x16x134xbf16, #tpu.memory_space<vmem>>, vector<1x1x16x128xbf16>
    %4 = vector.shape_cast %3 : vector<1x1x16x128xbf16> to vector<16x128xbf16>
    %c16 = arith.constant 16 : index
    %c0_8 = arith.constant 0 : index
    %5 = vector.load %arg6[%c16, %c0_8] : memref<112x128xbf16, #tpu.memory_space<vmem>>, vector<16x128xbf16>
    tpu.vector_store %arg6[%c16, %c0_8], %4 {strides = array<i32>} : memref<112x128xbf16, #tpu.memory_space<vmem>>, vector<16x128xbf16>,
    %c0_9 = arith.constant 0 : index
    %c0_10 = arith.constant 0 : index
    %c0_11 = arith.constant 0 : index
    %c2 = arith.constant 2 : index
    %6 = vector.load %arg2[%c0_9, %c0_10, %c0_11, %c2] : memref<1x1x16x134xbf16, #tpu.memory_space<vmem>>, vector<1x1x16x128xbf16>
    %7 = vector.shape_cast %6 : vector<1x1x16x128xbf16> to vector<16x128xbf16>
    %c32 = arith.constant 32 : index
    %c0_12 = arith.constant 0 : index
    %8 = vector.load %arg6[%c32, %c0_12] : memref<112x128xbf16, #tpu.memory_space<vmem>>, vector<16x128xbf16>
    tpu.vector_store %arg6[%c32, %c0_12], %7 {strides = array<i32>} : memref<112x128xbf16, #tpu.memory_space<vmem>>, vector<16x128xbf16>,
    %c0_13 = arith.constant 0 : index
    %c0_14 = arith.constant 0 : index
    %c0_15 = arith.constant 0 : index
    %c3 = arith.constant 3 : index
    %9 = vector.load %arg2[%c0_13, %c0_14, %c0_15, %c3] : memref<1x1x16x134xbf16, #tpu.memory_space<vmem>>, vector<1x1x16x128xbf16>
    %10 = vector.shape_cast %9 : vector<1x1x16x128xbf16> to vector<16x128xbf16>
    %c48 = arith.constant 48 : index
    %c0_16 = arith.constant 0 : index
    %11 = vector.load %arg6[%c48, %c0_16] : memref<112x128xbf16, #tpu.memory_space<vmem>>, vector<16x128xbf16>
    tpu.vector_store %arg6[%c48, %c0_16], %10 {strides = array<i32>} : memref<112x128xbf16, #tpu.memory_space<vmem>>, vector<16x128xbf16>,
    %c0_17 = arith.constant 0 : index
    %c0_18 = arith.constant 0 : index
    %c0_19 = arith.constant 0 : index
    %c4 = arith.constant 4 : index
    %12 = vector.load %arg2[%c0_17, %c0_18, %c0_19, %c4] : memref<1x1x16x134xbf16, #tpu.memory_space<vmem>>, vector<1x1x16x128xbf16>
    %13 = vector.shape_cast %12 : vector<1x1x16x128xbf16> to vector<16x128xbf16>
    %c64 = arith.constant 64 : index
    %c0_20 = arith.constant 0 : index
    %14 = vector.load %arg6[%c64, %c0_20] : memref<112x128xbf16, #tpu.memory_space<vmem>>, vector<16x128xbf16>
    tpu.vector_store %arg6[%c64, %c0_20], %13 {strides = array<i32>} : memref<112x128xbf16, #tpu.memory_space<vmem>>, vector<16x128xbf16>,
    %c0_21 = arith.constant 0 : index
    %c0_22 = arith.constant 0 : index
    %c0_23 = arith.constant 0 : index
    %c5 = arith.constant 5 : index
    %15 = vector.load %arg2[%c0_21, %c0_22, %c0_23, %c5] : memref<1x1x16x134xbf16, #tpu.memory_space<vmem>>, vector<1x1x16x128xbf16>
    %16 = vector.shape_cast %15 : vector<1x1x16x128xbf16> to vector<16x128xbf16>
    %c80 = arith.constant 80 : index
    %c0_24 = arith.constant 0 : index
    %17 = vector.load %arg6[%c80, %c0_24] : memref<112x128xbf16, #tpu.memory_space<vmem>>, vector<16x128xbf16>
    tpu.vector_store %arg6[%c80, %c0_24], %16 {strides = array<i32>} : memref<112x128xbf16, #tpu.memory_space<vmem>>, vector<16x128xbf16>,
    %c0_25 = arith.constant 0 : index
    %c0_26 = arith.constant 0 : index
    %c0_27 = arith.constant 0 : index
    %c6 = arith.constant 6 : index
    %18 = vector.load %arg2[%c0_25, %c0_26, %c0_27, %c6] : memref<1x1x16x134xbf16, #tpu.memory_space<vmem>>, vector<1x1x16x128xbf16>
    %19 = vector.shape_cast %18 : vector<1x1x16x128xbf16> to vector<16x128xbf16>
    %c96 = arith.constant 96 : index
    %c0_28 = arith.constant 0 : index
    %20 = vector.load %arg6[%c96, %c0_28] : memref<112x128xbf16, #tpu.memory_space<vmem>>, vector<16x128xbf16>
    tpu.vector_store %arg6[%c96, %c0_28], %19 {strides = array<i32>} : memref<112x128xbf16, #tpu.memory_space<vmem>>, vector<16x128xbf16>,
    %c0_29 = arith.constant 0 : index
    %c0_30 = arith.constant 0 : index
    %21 = vector.load %arg3[%c0_29, %c0_30] : memref<32x112xbf16, #tpu.memory_space<vmem>>, vector<32x112xbf16>
    %c0_31 = arith.constant 0 : index
    %c0_32 = arith.constant 0 : index
    %22 = vector.load %arg6[%c0_31, %c0_32] : memref<112x128xbf16, #tpu.memory_space<vmem>>, vector<112x128xbf16>
    %cst = arith.constant dense<0.000000e+00> : vector<32x128xf32>
    %23 = tpu.matmul %21, %22, %cst {dimension_numbers = #tpu.dot_dimension_numbers<[1], [0], [0], [1], [0, 0, 1, 1], [], []>} : vector<32x112xbf16>, vector<112x128xbf16>, vector<32x128xf32> -> vector<32x128xf32>
    %c0_33 = arith.constant 0 : index
    %c0_34 = arith.constant 0 : index
    %24 = vector.load %arg4[%c0_33, %c0_34] : memref<32x1xf32, #tpu.memory_space<vmem>>, vector<32x1xf32>
    %25 = vector.broadcast %24 : vector<32x1xf32> to vector<32x128xf32>
    %26 = arith.addf %23, %25 : vector<32x128xf32>
    %cst_35 = arith.constant 5.000000e-01 : f32
    %27 = vector.broadcast %cst_35 : f32 to vector<32x128xf32>
    %28 = arith.mulf %27, %26 : vector<32x128xf32>
    %29 = math.tanh %28 : vector<32x128xf32>
    %cst_36 = arith.constant 5.000000e-01 : f32
    %30 = vector.broadcast %cst_36 : f32 to vector<32x128xf32>
    %31 = arith.mulf %30, %29 : vector<32x128xf32>
    %cst_37 = arith.constant 5.000000e-01 : f32
    %32 = vector.broadcast %cst_37 : f32 to vector<32x128xf32>
    %33 = arith.addf %31, %32 : vector<32x128xf32>
    %34 = arith.mulf %26, %33 : vector<32x128xf32>
    %c0_38 = arith.constant 0 : index
    %c0_39 = arith.constant 0 : index
    %c0_40 = arith.constant 0 : index
    %35 = vector.load %arg5[%c0_38, %c0_39, %c0_40] : memref<1x32x128xf32, #tpu.memory_space<vmem>>, vector<1x32x128xf32>
    %36 = vector.shape_cast %35 : vector<1x32x128xf32> to vector<32x128xf32>
    %37 = vector.shape_cast %34 : vector<32x128xf32> to vector<1x32x128xf32>
    tpu.vector_store %arg5[%c0_38, %c0_39, %c0_40], %37 {strides = array<i32>} : memref<1x32x128xf32, #tpu.memory_space<vmem>>, vector<1x32x128xf32>,
    return
  }
  func.func @transform_0(%arg0: i32, %arg1: i32) -> (i32, i32, i32, i32) {
    %c0_i32 = arith.constant 0 : i32
    %c0_i32_0 = arith.constant 0 : i32
    %c0_i32_1 = arith.constant 0 : i32
    return %arg0, %arg1, %c0_i32, %c0_i32_0 : i32, i32, i32, i32
  }
  func.func @transform_1(%arg0: i32, %arg1: i32) -> (i32, i32) {
    %c0_i32 = arith.constant 0 : i32
    %c0_i32_0 = arith.constant 0 : i32
    %c0_i32_1 = arith.constant 0 : i32
    return %c0_i32, %c0_i32_0 : i32, i32
  }
  func.func @transform_2(%arg0: i32, %arg1: i32) -> (i32, i32) {
    %c0_i32 = arith.constant 0 : i32
    %c0_i32_0 = arith.constant 0 : i32
    %c0_i32_1 = arith.constant 0 : i32
    return %c0_i32, %c0_i32_0 : i32, i32
  }
  func.func @transform_3(%arg0: i32, %arg1: i32) -> (i32, i32, i32) {
    %c0_i32 = arith.constant 0 : i32
    %c0_i32_0 = arith.constant 0 : i32
    return %arg0, %c0_i32, %arg1 : i32, i32, i32
  }
}

</mosaic_0001>

<bundles_post_ra>
// kernel: first_layers_block.1
= control target key start
LH: loop header
LB: loop body
LE: loop exit
PB: predicated region body
PF: predicated region fallthrough
CT: control target
= control target key end

     0   :  { %s724_s12 = smov 0   ;;  %s726_s13 = smov 0   ;;  %s781_s0 = inlined_call_operand.vmem [shape: bf16[2,1,16,134], index: 0, kind: input, shape index: {}]   ;;  %s782_s1 = inlined_call_operand.vmem [shape: bf16[32,112], index: 1, kind: input, shape index: {}]   ;;  %s783_s2 = inlined_call_operand.vmem [shape: f32[32,1], index: 2, kind: input, shape index: {}]   ;;  %s784_s3 = inlined_call_operand.vmem [shape: f32[2,32,128], index: 3, kind: output, shape index: {}]  }
   0x1   :  { %s728_s14 = smov 0  }
   0x2 LB: > { %s25_s15 = sadd.s32 1, %s691_s13  ;;  %p576_p0 = scmp.ge.s32.totalorder %s695_s14, 1  ;;  %s695_s14 = sphi %s728_s14, %s13_s14   ;;  %s691_s13 = sphi %s726_s13, %s786_s13   ;;  %s687_s12 = sphi %s724_s12, %s785_s12  }
   0x3   : > { %p27_p1 = scmp.ge.s32.totalorder %s25_s15, 2  ;;  %p157_p2 = scmp.lt.s32.totalorder %s695_s14, 3 }
   0x5   : > { %s788_s15 = smov (%p27_p1, %s25_s15), 0  ;;  %p158_p3 = pnand %p576_p0, %p157_p2 }
   0x6   : > { %p188_p4 = scmp.lt.s32.totalorder (!%p158_p3), %s687_s12, 1  ;;  %s697_s20 = smov (!%p158_p3), 122  }
   0x7   : > { %161 = sbr.rel (%p158_p3) target bundleno = 398 (0x18e), region = 32  ;;  %s698_s21 = smov (!%p158_p3), 123  }
   0x8   : > { %s699_s22 = smov (!%p158_p3), 124   ;;  %s700_s23 = smov (!%p158_p3), 125  }
   0x9   : > { %s701_s24 = smov (!%p158_p3), 126   ;;  %s702_s25 = smov (!%p158_p3), 127  }
   0xc   : > { %s790_s12 = smov (!%p188_p4, %s687_s12), 1  ;;  %v663_v4 = vld [vmem:[%s782_s1] sm:$0xff]   ;;  %vm406_vm0 = vcmask 916480   ;;  %v331_v5 = vld [vmem:[%s783_s2 + $0x8] sm:$0xff]  ;;  %v703_v7 = vmov 0   ;;  %v332_v8 = vld [vmem:[%s783_s2 + $0x10] sm:$0xff] }
   0xd   : > { %s594_s16 = sshll.u32 %s790_s12, 4  ;;  %619 = vmatprep.mubr.msk.bf16.mxu0 %vm406_vm0, %v663_v4  ;;  %v330_v6 = vld [vmem:[%s783_s2] sm:$0xff]  ;;  %655 = vset.pattern.permute.xlu1 %v703_v7  ;;  %v333_v9 = vld [vmem:[%s783_s2 + $0x18] sm:$0xff]  ;;  %vm305_vm1 = vcmask 998400   ;;  %vm288_vm2 = vcmask 1006592   ;;  %vm271_vm3 = vcmask 1014784  }
   0xe   : > { %s196_s19 = scalar_lea.vmem %s781_s0, %s594_s16  ;;  %654 = vset.pattern.permute.xlu0 %v703_v7  ;;  %vm254_vm4 = vcmask 1022976   ;;  %vm237_vm5 = vcmask 1031168   ;;  %vm220_vm6 = vcmask 1039360   ;;  %v664_v53 = vld [vmem:[%s782_s1 + $0x8] sm:$0xff]   ;;  %s595_s11 = sshll.u32 %s790_s12, 5 }
   0xf   : > { %v295_v0 = vld [vmem:[%s196_s19] sm:$0xff]  ;;  %v296_v1 = vld [vmem:[%s196_s19 + $0x8] sm:$0xff]  ;;  %s204_s18 = scalar_lea.vmem %s784_s3, %s595_s11 }
  0x10   : > { %299 = vrot.lane.b32.xlu0 %v295_v0, %s697_s20  ;;  %282 = vrot.lane.b32.xlu1 %v295_v0, %s698_s21  ;;  %v206_v2 = vld [vmem:[%s196_s19] sm:$0xf]  ;;  %v207_v3 = vld [vmem:[%s196_s19 + $0x8] sm:$0xf] }
  0x11   : > { %208 = vst [vmem:[#allocation2] sm:$0xf] %v206_v2  ;;  %209 = vst [vmem:[#allocation2 + $0x4] sm:$0xf] %v207_v3 }
  0x14   : > { %301 = vrot.lane.b32.xlu0 %v296_v1, %s697_s20  ;;  %284 = vrot.lane.b32.xlu1 %v296_v1, %s698_s21 }
  0x18   : > { %267 = vrot.lane.b32.xlu1 %v296_v1, %s699_s22  ;;  %265 = vrot.lane.b32.xlu0 %v295_v0, %s699_s22  ;;  %v662_v52 = vld [vmem:[#allocation2] sm:$0xff]  }
  0x1c   : > { %250 = vrot.lane.b32.xlu1 %v296_v1, %s700_s23  ;;  %248 = vrot.lane.b32.xlu0 %v295_v0, %s700_s23 }
  0x20   : > { %233 = vrot.lane.b32.xlu1 %v296_v1, %s701_s24  ;;  %231 = vrot.lane.b32.xlu0 %v295_v0, %s701_s24 }
  0x24   : > { %216 = vrot.lane.b32.xlu1 %v296_v1, %s702_s25  ;;  %214 = vrot.lane.b32.xlu0 %v295_v0, %s702_s25 }
  0x28   : > { %341 = vperm.xlu1 %655, %v331_v5   ;;  %336 = vperm.xlu0 %654, %v330_v6  }
  0x2c   : > { %346 = vperm.xlu1 %655, %v332_v8   ;;  %351 = vperm.xlu0 %654, %v333_v9  }
  0x82   : > { %v300_v10 = vpop.permute.xlu0 %299  ;;  %v283_v11 = vpop.permute.xlu1 %282 }
  0x83   : > { %v303_v12 = vrot.slane %v300_v10, 4  ;;  %v286_v13 = vrot.slane %v283_v11, 4 }
  0x85   : > { %v306_v14 = vsel %vm305_vm1, %v300_v10, %v303_v12  ;;  %v289_v15 = vsel %vm288_vm2, %v283_v11, %v286_v13 }
  0x86   : > { %310 = vst [vmem:[#allocation2 + $0x30] sm:$0xf] %v306_v14  ;;  %293 = vst [vmem:[#allocation2 + $0x28] sm:$0xf] %v289_v15  ;;  %v302_v16 = vpop.permute.xlu0 %301  ;;  %v285_v17 = vpop.permute.xlu1 %284 }
  0x87   : > { %v304_v18 = vrot.slane %v302_v16, 4  ;;  %v287_v19 = vrot.slane %v285_v17, 4 }
  0x89   : > { %v307_v20 = vsel %vm305_vm1, %v302_v16, %v304_v18  ;;  %v290_v21 = vsel %vm288_vm2, %v285_v17, %v287_v19 }
  0x8a   : > { %311 = vst [vmem:[#allocation2 + $0x34] sm:$0xf] %v307_v20  ;;  %294 = vst [vmem:[#allocation2 + $0x2c] sm:$0xf] %v290_v21  ;;  %v268_v22 = vpop.permute.xlu1 %267  ;;  %v266_v23 = vpop.permute.xlu0 %265 }
  0x8b   : > { %v270_v24 = vrot.slane %v268_v22, 4  ;;  %v269_v25 = vrot.slane %v266_v23, 4 }
  0x8d   : > { %v273_v26 = vsel %vm271_vm3, %v268_v22, %v270_v24  ;;  %v272_v27 = vsel %vm271_vm3, %v266_v23, %v269_v25 }
  0x8e   : > { %277 = vst [vmem:[#allocation2 + $0x24] sm:$0xf] %v273_v26  ;;  %276 = vst [vmem:[#allocation2 + $0x20] sm:$0xf] %v272_v27  ;;  %v251_v28 = vpop.permute.xlu1 %250  ;;  %v249_v29 = vpop.permute.xlu0 %248 }
  0x8f   : > { %v253_v30 = vrot.slane %v251_v28, 4  ;;  %v252_v31 = vrot.slane %v249_v29, 4 }
  0x91   : > { %v256_v32 = vsel %vm254_vm4, %v251_v28, %v253_v30  ;;  %v255_v33 = vsel %vm254_vm4, %v249_v29, %v252_v31  ;;  %v656_v34 = vld [vmem:[#allocation2 + $0x30] sm:$0xff]   ;;  %v657_v39 = vld [vmem:[#allocation2 + $0x28] sm:$0xff]  }
  0x92   : > { %260 = vst [vmem:[#allocation2 + $0x1c] sm:$0xf] %v256_v32  ;;  %259 = vst [vmem:[#allocation2 + $0x18] sm:$0xf] %v255_v33  ;;  %v234_v35 = vpop.permute.xlu1 %233  ;;  %v232_v36 = vpop.permute.xlu0 %231  ;;  %605 = vmatprep.subr.bf16.mxu0 %v656_v34 }
  0x93   : > { %v236_v37 = vrot.slane %v234_v35, 4  ;;  %v235_v38 = vrot.slane %v232_v36, 4  ;;  %606 = vmatpush3.bf16.msra.mxu0 %v656_v34 }
  0x94   : > { %607 = vmatprep.subr.bf16.mxu0 %v657_v39 }
  0x95   : > { %v239_v40 = vsel %vm237_vm5, %v234_v35, %v236_v37  ;;  %v238_v41 = vsel %vm237_vm5, %v232_v36, %v235_v38  ;;  %v658_v42 = vld [vmem:[#allocation2 + $0x20] sm:$0xff]  }
  0x96   : > { %243 = vst [vmem:[#allocation2 + $0x14] sm:$0xf] %v239_v40  ;;  %242 = vst [vmem:[#allocation2 + $0x10] sm:$0xf] %v238_v41  ;;  %v217_v43 = vpop.permute.xlu1 %216  ;;  %v215_v44 = vpop.permute.xlu0 %214 }
  0x97   : > { %v219_v45 = vrot.slane %v217_v43, 4  ;;  %v218_v46 = vrot.slane %v215_v44, 4  ;;  %608 = vmatpush3.bf16.msra.mxu0 %v657_v39 }
  0x98   : > { %609 = vmatprep.subr.bf16.mxu0 %v658_v42 }
  0x99   : > { %v222_v47 = vsel %vm220_vm6, %v217_v43, %v219_v45  ;;  %v221_v48 = vsel %vm220_vm6, %v215_v44, %v218_v46  ;;  %v659_v49 = vld [vmem:[#allocation2 + $0x18] sm:$0xff]  }
  0x9a   : > { %226 = vst [vmem:[#allocation2 + $0xc] sm:$0xf] %v222_v47  ;;  %225 = vst [vmem:[#allocation2 + $0x8] sm:$0xf] %v221_v48 }
  0x9b   : > { %610 = vmatpush3.bf16.msra.mxu0 %v658_v42 }
  0x9c   : > { %611 = vmatprep.subr.bf16.mxu0 %v659_v49 }
  0x9d   : > { %v660_v50 = vld [vmem:[#allocation2 + $0x10] sm:$0xff]  }
  0x9f   : > { %612 = vmatpush3.bf16.msra.mxu0 %v659_v49 }
  0xa0   : > { %613 = vmatprep.subr.bf16.mxu0 %v660_v50 }
  0xa1   : > { %v661_v51 = vld [vmem:[#allocation2 + $0x8] sm:$0xff]  }
  0xa3   : > { %614 = vmatpush3.bf16.msra.mxu0 %v660_v50  ;;  %v342_v54 = vpop.permute.xlu1 %341  ;;  %v337_v55 = vpop.permute.xlu0 %336 }
  0xa4   : > { %615 = vmatprep.subr.bf16.mxu0 %v661_v51 }
  0xa7   : > { %616 = vmatpush3.bf16.msra.mxu0 %v661_v51  ;;  %v347_v56 = vpop.permute.xlu1 %346  ;;  %v352_v62 = vpop.permute.xlu0 %351 }
  0xa8   : > { %617 = vmatprep.subr.bf16.mxu0 %v662_v52 }
  0xab   : > { %618 = vmatpush3.bf16.msra.mxu0 %v662_v52 }
  0xae   : > { %620 = vmatmul.mubr.msk.bf16.vlgmr.msra.gmra.mxu0 %vm406_vm0, %v664_v53 }
 0x16e   : > { %v621_v57 = vpop.f32.mrf.mxu0 }
 0x16f   : > { %v456_v58 = vadd.f32 %v621_v57, %v347_v56 }
 0x170   : > { %v447_v59 = vpop.f32.mrf.mxu0 }
 0x171   : > { %v464_v60 = vmul.f32 0.5, %v456_v58  ;;  %v448_v61 = vadd.f32 %v447_v59, %v337_v55 }
 0x172   : > { %v622_v63 = vpop.f32.mrf.mxu0 }
 0x173   : > { %665 = vtanh.f32 %v464_v60  ;;  %v462_v0 = vmul.f32 0.5, %v448_v61  ;;  %v459_v1 = vadd.f32 %v622_v63, %v352_v62 }
 0x174   : > { %v450_v2 = vpop.f32.mrf.mxu0 }
 0x175   : > { %667 = vtanh.f32 %v462_v0  ;;  %v465_v3 = vmul.f32 0.5, %v459_v1  ;;  %v451_v4 = vadd.f32 %v450_v2, %v342_v54 }
 0x177   : > { %669 = vtanh.f32 %v465_v3  ;;  %v463_v5 = vmul.f32 0.5, %v451_v4 }
 0x179   : > { %671 = vtanh.f32 %v463_v5 }
 0x180   : > { %v666_v6 = vpop.eup %665 }
 0x181   : > { %v472_v7 = vmul.f32 0.5, %v666_v6 }
 0x182   : > { %v668_v8 = vpop.eup %667 }
 0x183   : > { %v476_v9 = vadd.f32 0.5, %v472_v7  ;;  %v470_v10 = vmul.f32 0.5, %v668_v8 }
 0x184   : > { %v670_v11 = vpop.eup %669 }
 0x185   : > { %v480_v12 = vmul.f32 %v476_v9, %v456_v58  ;;  %v474_v13 = vadd.f32 0.5, %v470_v10  ;;  %v473_v14 = vmul.f32 0.5, %v670_v11 }
 0x186   : > { %v672_v15 = vpop.eup %671 }
 0x187   : > { %484 = vst [vmem:[%s204_s18 + $0x10] sm:$0xff] %v480_v12  ;;  %v478_v16 = vmul.f32 %v474_v13, %v448_v61  ;;  %v477_v17 = vadd.f32 0.5, %v473_v14  ;;  %v471_v18 = vmul.f32 0.5, %v672_v15 }
 0x189   : > { %482 = vst [vmem:[%s204_s18] sm:$0xff] %v478_v16  ;;  %v481_v19 = vmul.f32 %v477_v17, %v459_v1  ;;  %v475_v20 = vadd.f32 0.5, %v471_v18 }
 0x18b   : > { %485 = vst [vmem:[%s204_s18 + $0x18] sm:$0xff] %v481_v19  ;;  %v479_v21 = vmul.f32 %v475_v20, %v451_v4 }
 0x18d   : > { %483 = vst [vmem:[%s204_s18 + $0x8] sm:$0xff] %v479_v21 }
 0x18e PF: > { %s13_s14 = sadd.s32 1, %s695_s14   ;;  %s785_s12 = smov %s691_s13 }
 0x18f   : > { %p10_p5 = scmp.ge.s32.totalorder %s13_s14, 4   ;;  %s786_s13 = smov %s788_s15 }
 0x191   :  { %12 = sbr.rel (!%p10_p5) target bundleno = 2 (0x2), region = 62 }

</bundles_post_ra>
